<compile_context>
chip_gen: v7x
topology: tpu7x:2x2x1
jax: 0.10.0
libtpu: 0.0.40
codegen_flags: <defaults>
</compile_context>

<pallas_src>
import functools

import jax
import jax.numpy as jnp
from jax import lax
from jax.experimental import pallas as pl
from jax.experimental.pallas import tpu as pltpu

BN_EPS = 1e-5


def critic_kernel(state_ref, action_ref,
                  w1_ref,            # (S, F1)  in MXU dtype (bf16 by default)
                  w2s_ref,           # (F1, F2) in MXU dtype
                  tab_ref,           # (5+A, F1) f32 slab, see pack_params()
                  out_ref,
                  *, action_size, mxu_dtype, use_vpu_fc1):
    f2 = w2s_ref.shape[1]

    # ---- fc1: (B, S) @ (S, F1).  fc1 bias omitted: it cancels exactly under
    # training-mode BatchNorm mean subtraction. ----
    if use_vpu_fc1:
        # Small-batch latency path: S broadcast FMAs on the VPU, no MXU round trip.
        w1f = w1_ref[...].astype(jnp.float32)
        s_dim = state_ref.shape[1]
        x = state_ref[:, 0:1] * w1f[0:1, :]
        for s in range(1, s_dim):            # static unroll; S is tiny (e.g. 24)
            x = x + state_ref[:, s:s + 1] * w1f[s:s + 1, :]
    else:
        x = jnp.dot(state_ref[...].astype(mxu_dtype), w1_ref[...],
                    preferred_element_type=jnp.float32)

    # ---- BatchNorm1d (training-mode batch stats, biased variance), f32 VPU math ----
    gamma = tab_ref[0:1, :]
    beta = tab_ref[1:2, :]
    inv_b = 1.0 / x.shape[0]
    mean = jnp.sum(x, axis=0, keepdims=True) * inv_b
    mean_sq = jnp.sum(x * x, axis=0, keepdims=True) * inv_b
    var = jnp.maximum(mean_sq - mean * mean, 0.0)          # one-pass variance
    scale = lax.rsqrt(var + BN_EPS) * gamma                 # folded (1, F1) scale
    x = (x - mean) * scale + beta

    # ---- ReLU ----
    x = jnp.maximum(x, 0.0)

    # ---- fc2 on cat([x, action]):
    #        x @ W2s on the MXU;  action @ W2a (K=A) as A broadcast FMAs on the VPU ----
    b2 = tab_ref[2:3, 0:f2]
    h = jnp.dot(x.astype(mxu_dtype), w2s_ref[...],
                preferred_element_type=jnp.float32) + b2
    for a in range(action_size):             # static unroll, A is tiny (e.g. 2)
        h = h + action_ref[:, a:a + 1] * tab_ref[4 + a:5 + a, 0:f2]
    h = jnp.maximum(h, 0.0)

    # ---- fc3 (F2 -> 1): VPU multiply + lane reduction, bypassing the MXU ----
    w3_row = tab_ref[3:4, 0:f2]
    b3 = tab_ref[4 + action_size:5 + action_size, 0:1]      # (1,1), broadcasts
    out_ref[...] = jnp.sum(h * w3_row, axis=-1, keepdims=True) + b3


def pack_params(params, mxu_dtype=jnp.bfloat16):
    """One-time packing: weights cast to the MXU dtype, all tiny per-feature
    vectors merged into a single (5+A, F1) f32 VMEM slab.

    slab rows: 0=gamma, 1=beta, 2=b2(pad), 3=w3_row(pad),
               4..4+A-1 = w2a rows (pad), 4+A = b3 (pad, value at lane 0).
    """
    f1 = params["w1"].shape[1]
    a_dim = params["w2a"].shape[0]

    def pad_row(v):
        return jnp.pad(v, ((0, 0), (0, f1 - v.shape[1])))

    rows = [params["gamma"], params["beta"],
            pad_row(params["b2"]), pad_row(params["w3"].T)]
    for a in range(a_dim):
        rows.append(pad_row(params["w2a"][a:a + 1, :]))
    rows.append(pad_row(params["b3"]))
    tab = jnp.concatenate(rows, axis=0).astype(jnp.float32)

    return {
        "w1": params["w1"].astype(mxu_dtype),
        "w2s": params["w2s"].astype(mxu_dtype),
        "tab": tab,
    }


def critic_forward(state, action, packed, *, vpu_fc1_max_batch=32):
    B, S = state.shape
    if B < 2:
        # PyTorch training-mode BatchNorm1d raises for B=1; mirror that.
        raise ValueError("training-mode BatchNorm requires batch size >= 2")
    A = action.shape[1]
    f1 = packed["w1"].shape[1]
    f2 = packed["w2s"].shape[1]
    mxu_dtype = packed["w1"].dtype

    # Generous VMEM budget derived from B (activations are the only thing that
    # scales); clamped to stay within every generation's physical VMEM (v7x: 64 MiB).
    weight_bytes = sum(int(v.size) * v.dtype.itemsize
                       for v in (packed["w1"], packed["w2s"], packed["tab"]))
    act_bytes = 4 * B * (S + A + 4 * f1 + 3 * f2 + 8)
    vmem_limit = int(min(64 << 20, max(32 << 20, 4 * (weight_bytes + act_bytes))))

    kernel = functools.partial(
        critic_kernel,
        action_size=A,
        mxu_dtype=mxu_dtype,
        use_vpu_fc1=(B <= vpu_fc1_max_batch),
    )
    vmem = pl.BlockSpec(memory_space=pltpu.MemorySpace.VMEM)
    return pl.pallas_call(
        kernel,
        out_shape=jax.ShapeDtypeStruct((B, 1), jnp.float32),
        in_specs=[vmem, vmem, vmem, vmem, vmem],
        out_specs=vmem,
        compiler_params=pltpu.CompilerParams(vmem_limit_bytes=vmem_limit),
    )(state, action, packed["w1"], packed["w2s"], packed["tab"])


def init_params(key, state_size, action_size, fc1_units=256, fc2_units=128):
    """Deterministic init mirroring the PyTorch reset_parameters() ranges."""
    ks = jax.random.split(key, 8)
    lim1 = 1.0 / jnp.sqrt(float(fc1_units))   # hidden_init uses weight.size()[0] = out_features
    lim2 = 1.0 / jnp.sqrt(float(fc2_units))
    lim3 = 3e-4
    # weights stored as (in_features, out_features) so the kernel does x @ W + b
    w1 = jax.random.uniform(ks[0], (state_size, fc1_units), jnp.float32, -lim1, lim1)
    b1 = jax.random.uniform(ks[1], (1, fc1_units), jnp.float32, -lim1, lim1)
    w2 = jax.random.uniform(ks[2], (fc1_units + action_size, fc2_units), jnp.float32, -lim2, lim2)
    b2 = jax.random.uniform(ks[3], (1, fc2_units), jnp.float32, -lim2, lim2)
    w3 = jax.random.uniform(ks[4], (fc2_units, 1), jnp.float32, -lim3, lim3)
    b3 = jax.random.uniform(ks[5], (1, 1), jnp.float32, -lim3, lim3)
    gamma = jnp.ones((1, fc1_units), jnp.float32)   # BatchNorm1d default affine init
    beta = jnp.zeros((1, fc1_units), jnp.float32)
    return {
        "w1": w1, "b1": b1, "gamma": gamma, "beta": beta,
        "w2": w2,
        "w2s": w2[:fc1_units, :],          # rows multiplying the bn/relu branch
        "w2a": w2[fc1_units:, :],          # rows multiplying the action branch
        "b2": b2, "w3": w3, "b3": b3,
    }


def critic_reference(state, action, p):
    """Pure-JAX mirror of the PyTorch forward (training-mode BatchNorm)."""
    x = state @ p["w1"] + p["b1"]
    mean = jnp.mean(x, axis=0, keepdims=True)
    var = jnp.mean((x - mean) ** 2, axis=0, keepdims=True)
    x = (x - mean) * lax.rsqrt(var + BN_EPS) * p["gamma"] + p["beta"]
    x = jnp.maximum(x, 0.0)
    xa = jnp.concatenate([x, action], axis=1)
    h = jnp.maximum(xa @ p["w2"] + p["b2"], 0.0)
    return h @ p["w3"] + p["b3"]


if __name__ == "__main__":
    key = jax.random.PRNGKey(0)
    k_state, k_action, k_params, k_state2, k_action2 = jax.random.split(key, 5)

    state_size = 24      # e.g. Tennis env per-agent observation size
    action_size = 2
    params = init_params(k_params, state_size, action_size)

    # --- small batch (action-selection / act() path): VPU fc1 ---
    B_small = 8
    state = jax.random.normal(k_state, (B_small, state_size), jnp.float32)
    action = jax.random.uniform(k_action, (B_small, action_size), jnp.float32, -1.0, 1.0)
    q_ref_small = critic_reference(state, action, params)

    # bf16 weight storage (default fast path)
    packed_bf16 = pack_params(params, jnp.bfloat16)
    q_bf16 = jax.block_until_ready(critic_forward(state, action, packed_bf16))
    assert q_bf16.shape == (B_small, 1)
    assert jnp.allclose(q_bf16, q_ref_small, atol=2e-3, rtol=2e-2), "bf16 small-batch mismatch"

    # f32 weight storage (exact-parity path)
    packed_f32 = pack_params(params, jnp.float32)
    q_f32 = jax.block_until_ready(critic_forward(state, action, packed_f32))
    assert jnp.allclose(q_f32, q_ref_small, atol=3e-5, rtol=1e-4), "f32 small-batch mismatch"

    # --- larger replay-buffer batch: MXU fc1 path, bf16 weights ---
    B_big = 64
    state_b = jax.random.normal(k_state2, (B_big, state_size), jnp.float32)
    action_b = jax.random.uniform(k_action2, (B_big, action_size), jnp.float32, -1.0, 1.0)
    q_big = jax.block_until_ready(critic_forward(state_b, action_b, packed_bf16))
    q_ref_big = critic_reference(state_b, action_b, params)
    assert q_big.shape == (B_big, 1)
    assert jnp.allclose(q_big, q_ref_big, atol=2e-3, rtol=2e-2), "bf16 large-batch mismatch"

    print("KERNEL_OK")
</pallas_src>

<mosaic_0001>
module attributes {stable_mosaic.version = 11 : i64} {
  func.func @critic_kernel(%arg0: memref<8x24xf32, #tpu.memory_space<vmem>>, %arg1: memref<8x2xf32, #tpu.memory_space<vmem>>, %arg2: memref<24x256xbf16, #tpu.memory_space<vmem>>, %arg3: memref<256x128xbf16, #tpu.memory_space<vmem>>, %arg4: memref<7x256xf32, #tpu.memory_space<vmem>>, %arg5: memref<8x1xf32, #tpu.memory_space<vmem>>) attributes {dimension_semantics = [], scalar_prefetch = 0 : i64, scratch_operands = 0 : i64, tpu.core_type = #tpu.core_type<tc>} {
    %c0 = arith.constant 0 : index
    %c0_0 = arith.constant 0 : index
    %0 = vector.load %arg2[%c0, %c0_0] : memref<24x256xbf16, #tpu.memory_space<vmem>>, vector<24x256xbf16>
    %1 = arith.extf %0 : vector<24x256xbf16> to vector<24x256xf32>
    %c0_1 = arith.constant 0 : index
    %c0_2 = arith.constant 0 : index
    %2 = vector.load %arg0[%c0_1, %c0_2] : memref<8x24xf32, #tpu.memory_space<vmem>>, vector<8x1xf32>
    %3 = vector.extract_strided_slice %1 {offsets = [0, 0], sizes = [1, 256], strides = [1, 1]} : vector<24x256xf32> to vector<1x256xf32>
    %4 = vector.broadcast %2 : vector<8x1xf32> to vector<8x256xf32>
    %5 = vector.broadcast %3 : vector<1x256xf32> to vector<8x256xf32>
    %6 = arith.mulf %4, %5 : vector<8x256xf32>
    %c0_3 = arith.constant 0 : index
    %c1 = arith.constant 1 : index
    %7 = vector.load %arg0[%c0_3, %c1] : memref<8x24xf32, #tpu.memory_space<vmem>>, vector<8x1xf32>
    %8 = vector.extract_strided_slice %1 {offsets = [1, 0], sizes = [1, 256], strides = [1, 1]} : vector<24x256xf32> to vector<1x256xf32>
    %9 = vector.broadcast %7 : vector<8x1xf32> to vector<8x256xf32>
    %10 = vector.broadcast %8 : vector<1x256xf32> to vector<8x256xf32>
    %11 = arith.mulf %9, %10 : vector<8x256xf32>
    %12 = arith.addf %6, %11 : vector<8x256xf32>
    %c0_4 = arith.constant 0 : index
    %c2 = arith.constant 2 : index
    %13 = vector.load %arg0[%c0_4, %c2] : memref<8x24xf32, #tpu.memory_space<vmem>>, vector<8x1xf32>
    %14 = vector.extract_strided_slice %1 {offsets = [2, 0], sizes = [1, 256], strides = [1, 1]} : vector<24x256xf32> to vector<1x256xf32>
    %15 = vector.broadcast %13 : vector<8x1xf32> to vector<8x256xf32>
    %16 = vector.broadcast %14 : vector<1x256xf32> to vector<8x256xf32>
    %17 = arith.mulf %15, %16 : vector<8x256xf32>
    %18 = arith.addf %12, %17 : vector<8x256xf32>
    %c0_5 = arith.constant 0 : index
    %c3 = arith.constant 3 : index
    %19 = vector.load %arg0[%c0_5, %c3] : memref<8x24xf32, #tpu.memory_space<vmem>>, vector<8x1xf32>
    %20 = vector.extract_strided_slice %1 {offsets = [3, 0], sizes = [1, 256], strides = [1, 1]} : vector<24x256xf32> to vector<1x256xf32>
    %21 = vector.broadcast %19 : vector<8x1xf32> to vector<8x256xf32>
    %22 = vector.broadcast %20 : vector<1x256xf32> to vector<8x256xf32>
    %23 = arith.mulf %21, %22 : vector<8x256xf32>
    %24 = arith.addf %18, %23 : vector<8x256xf32>
    %c0_6 = arith.constant 0 : index
    %c4 = arith.constant 4 : index
    %25 = vector.load %arg0[%c0_6, %c4] : memref<8x24xf32, #tpu.memory_space<vmem>>, vector<8x1xf32>
    %26 = vector.extract_strided_slice %1 {offsets = [4, 0], sizes = [1, 256], strides = [1, 1]} : vector<24x256xf32> to vector<1x256xf32>
    %27 = vector.broadcast %25 : vector<8x1xf32> to vector<8x256xf32>
    %28 = vector.broadcast %26 : vector<1x256xf32> to vector<8x256xf32>
    %29 = arith.mulf %27, %28 : vector<8x256xf32>
    %30 = arith.addf %24, %29 : vector<8x256xf32>
    %c0_7 = arith.constant 0 : index
    %c5 = arith.constant 5 : index
    %31 = vector.load %arg0[%c0_7, %c5] : memref<8x24xf32, #tpu.memory_space<vmem>>, vector<8x1xf32>
    %32 = vector.extract_strided_slice %1 {offsets = [5, 0], sizes = [1, 256], strides = [1, 1]} : vector<24x256xf32> to vector<1x256xf32>
    %33 = vector.broadcast %31 : vector<8x1xf32> to vector<8x256xf32>
    %34 = vector.broadcast %32 : vector<1x256xf32> to vector<8x256xf32>
    %35 = arith.mulf %33, %34 : vector<8x256xf32>
    %36 = arith.addf %30, %35 : vector<8x256xf32>
    %c0_8 = arith.constant 0 : index
    %c6 = arith.constant 6 : index
    %37 = vector.load %arg0[%c0_8, %c6] : memref<8x24xf32, #tpu.memory_space<vmem>>, vector<8x1xf32>
    %38 = vector.extract_strided_slice %1 {offsets = [6, 0], sizes = [1, 256], strides = [1, 1]} : vector<24x256xf32> to vector<1x256xf32>
    %39 = vector.broadcast %37 : vector<8x1xf32> to vector<8x256xf32>
    %40 = vector.broadcast %38 : vector<1x256xf32> to vector<8x256xf32>
    %41 = arith.mulf %39, %40 : vector<8x256xf32>
    %42 = arith.addf %36, %41 : vector<8x256xf32>
    %c0_9 = arith.constant 0 : index
    %c7 = arith.constant 7 : index
    %43 = vector.load %arg0[%c0_9, %c7] : memref<8x24xf32, #tpu.memory_space<vmem>>, vector<8x1xf32>
    %44 = vector.extract_strided_slice %1 {offsets = [7, 0], sizes = [1, 256], strides = [1, 1]} : vector<24x256xf32> to vector<1x256xf32>
    %45 = vector.broadcast %43 : vector<8x1xf32> to vector<8x256xf32>
    %46 = vector.broadcast %44 : vector<1x256xf32> to vector<8x256xf32>
    %47 = arith.mulf %45, %46 : vector<8x256xf32>
    %48 = arith.addf %42, %47 : vector<8x256xf32>
    %c0_10 = arith.constant 0 : index
    %c8 = arith.constant 8 : index
    %49 = vector.load %arg0[%c0_10, %c8] : memref<8x24xf32, #tpu.memory_space<vmem>>, vector<8x1xf32>
    %50 = vector.extract_strided_slice %1 {offsets = [8, 0], sizes = [1, 256], strides = [1, 1]} : vector<24x256xf32> to vector<1x256xf32>
    %51 = vector.broadcast %49 : vector<8x1xf32> to vector<8x256xf32>
    %52 = vector.broadcast %50 : vector<1x256xf32> to vector<8x256xf32>
    %53 = arith.mulf %51, %52 : vector<8x256xf32>
    %54 = arith.addf %48, %53 : vector<8x256xf32>
    %c0_11 = arith.constant 0 : index
    %c9 = arith.constant 9 : index
    %55 = vector.load %arg0[%c0_11, %c9] : memref<8x24xf32, #tpu.memory_space<vmem>>, vector<8x1xf32>
    %56 = vector.extract_strided_slice %1 {offsets = [9, 0], sizes = [1, 256], strides = [1, 1]} : vector<24x256xf32> to vector<1x256xf32>
    %57 = vector.broadcast %55 : vector<8x1xf32> to vector<8x256xf32>
    %58 = vector.broadcast %56 : vector<1x256xf32> to vector<8x256xf32>
    %59 = arith.mulf %57, %58 : vector<8x256xf32>
    %60 = arith.addf %54, %59 : vector<8x256xf32>
    %c0_12 = arith.constant 0 : index
    %c10 = arith.constant 10 : index
    %61 = vector.load %arg0[%c0_12, %c10] : memref<8x24xf32, #tpu.memory_space<vmem>>, vector<8x1xf32>
    %62 = vector.extract_strided_slice %1 {offsets = [10, 0], sizes = [1, 256], strides = [1, 1]} : vector<24x256xf32> to vector<1x256xf32>
    %63 = vector.broadcast %61 : vector<8x1xf32> to vector<8x256xf32>
    %64 = vector.broadcast %62 : vector<1x256xf32> to vector<8x256xf32>
    %65 = arith.mulf %63, %64 : vector<8x256xf32>
    %66 = arith.addf %60, %65 : vector<8x256xf32>
    %c0_13 = arith.constant 0 : index
    %c11 = arith.constant 11 : index
    %67 = vector.load %arg0[%c0_13, %c11] : memref<8x24xf32, #tpu.memory_space<vmem>>, vector<8x1xf32>
    %68 = vector.extract_strided_slice %1 {offsets = [11, 0], sizes = [1, 256], strides = [1, 1]} : vector<24x256xf32> to vector<1x256xf32>
    %69 = vector.broadcast %67 : vector<8x1xf32> to vector<8x256xf32>
    %70 = vector.broadcast %68 : vector<1x256xf32> to vector<8x256xf32>
    %71 = arith.mulf %69, %70 : vector<8x256xf32>
    %72 = arith.addf %66, %71 : vector<8x256xf32>
    %c0_14 = arith.constant 0 : index
    %c12 = arith.constant 12 : index
    %73 = vector.load %arg0[%c0_14, %c12] : memref<8x24xf32, #tpu.memory_space<vmem>>, vector<8x1xf32>
    %74 = vector.extract_strided_slice %1 {offsets = [12, 0], sizes = [1, 256], strides = [1, 1]} : vector<24x256xf32> to vector<1x256xf32>
    %75 = vector.broadcast %73 : vector<8x1xf32> to vector<8x256xf32>
    %76 = vector.broadcast %74 : vector<1x256xf32> to vector<8x256xf32>
    %77 = arith.mulf %75, %76 : vector<8x256xf32>
    %78 = arith.addf %72, %77 : vector<8x256xf32>
    %c0_15 = arith.constant 0 : index
    %c13 = arith.constant 13 : index
    %79 = vector.load %arg0[%c0_15, %c13] : memref<8x24xf32, #tpu.memory_space<vmem>>, vector<8x1xf32>
    %80 = vector.extract_strided_slice %1 {offsets = [13, 0], sizes = [1, 256], strides = [1, 1]} : vector<24x256xf32> to vector<1x256xf32>
    %81 = vector.broadcast %79 : vector<8x1xf32> to vector<8x256xf32>
    %82 = vector.broadcast %80 : vector<1x256xf32> to vector<8x256xf32>
    %83 = arith.mulf %81, %82 : vector<8x256xf32>
    %84 = arith.addf %78, %83 : vector<8x256xf32>
    %c0_16 = arith.constant 0 : index
    %c14 = arith.constant 14 : index
    %85 = vector.load %arg0[%c0_16, %c14] : memref<8x24xf32, #tpu.memory_space<vmem>>, vector<8x1xf32>
    %86 = vector.extract_strided_slice %1 {offsets = [14, 0], sizes = [1, 256], strides = [1, 1]} : vector<24x256xf32> to vector<1x256xf32>
    %87 = vector.broadcast %85 : vector<8x1xf32> to vector<8x256xf32>
    %88 = vector.broadcast %86 : vector<1x256xf32> to vector<8x256xf32>
    %89 = arith.mulf %87, %88 : vector<8x256xf32>
    %90 = arith.addf %84, %89 : vector<8x256xf32>
    %c0_17 = arith.constant 0 : index
    %c15 = arith.constant 15 : index
    %91 = vector.load %arg0[%c0_17, %c15] : memref<8x24xf32, #tpu.memory_space<vmem>>, vector<8x1xf32>
    %92 = vector.extract_strided_slice %1 {offsets = [15, 0], sizes = [1, 256], strides = [1, 1]} : vector<24x256xf32> to vector<1x256xf32>
    %93 = vector.broadcast %91 : vector<8x1xf32> to vector<8x256xf32>
    %94 = vector.broadcast %92 : vector<1x256xf32> to vector<8x256xf32>
    %95 = arith.mulf %93, %94 : vector<8x256xf32>
    %96 = arith.addf %90, %95 : vector<8x256xf32>
    %c0_18 = arith.constant 0 : index
    %c16 = arith.constant 16 : index
    %97 = vector.load %arg0[%c0_18, %c16] : memref<8x24xf32, #tpu.memory_space<vmem>>, vector<8x1xf32>
    %98 = vector.extract_strided_slice %1 {offsets = [16, 0], sizes = [1, 256], strides = [1, 1]} : vector<24x256xf32> to vector<1x256xf32>
    %99 = vector.broadcast %97 : vector<8x1xf32> to vector<8x256xf32>
    %100 = vector.broadcast %98 : vector<1x256xf32> to vector<8x256xf32>
    %101 = arith.mulf %99, %100 : vector<8x256xf32>
    %102 = arith.addf %96, %101 : vector<8x256xf32>
    %c0_19 = arith.constant 0 : index
    %c17 = arith.constant 17 : index
    %103 = vector.load %arg0[%c0_19, %c17] : memref<8x24xf32, #tpu.memory_space<vmem>>, vector<8x1xf32>
    %104 = vector.extract_strided_slice %1 {offsets = [17, 0], sizes = [1, 256], strides = [1, 1]} : vector<24x256xf32> to vector<1x256xf32>
    %105 = vector.broadcast %103 : vector<8x1xf32> to vector<8x256xf32>
    %106 = vector.broadcast %104 : vector<1x256xf32> to vector<8x256xf32>
    %107 = arith.mulf %105, %106 : vector<8x256xf32>
    %108 = arith.addf %102, %107 : vector<8x256xf32>
    %c0_20 = arith.constant 0 : index
    %c18 = arith.constant 18 : index
    %109 = vector.load %arg0[%c0_20, %c18] : memref<8x24xf32, #tpu.memory_space<vmem>>, vector<8x1xf32>
    %110 = vector.extract_strided_slice %1 {offsets = [18, 0], sizes = [1, 256], strides = [1, 1]} : vector<24x256xf32> to vector<1x256xf32>
    %111 = vector.broadcast %109 : vector<8x1xf32> to vector<8x256xf32>
    %112 = vector.broadcast %110 : vector<1x256xf32> to vector<8x256xf32>
    %113 = arith.mulf %111, %112 : vector<8x256xf32>
    %114 = arith.addf %108, %113 : vector<8x256xf32>
    %c0_21 = arith.constant 0 : index
    %c19 = arith.constant 19 : index
    %115 = vector.load %arg0[%c0_21, %c19] : memref<8x24xf32, #tpu.memory_space<vmem>>, vector<8x1xf32>
    %116 = vector.extract_strided_slice %1 {offsets = [19, 0], sizes = [1, 256], strides = [1, 1]} : vector<24x256xf32> to vector<1x256xf32>
    %117 = vector.broadcast %115 : vector<8x1xf32> to vector<8x256xf32>
    %118 = vector.broadcast %116 : vector<1x256xf32> to vector<8x256xf32>
    %119 = arith.mulf %117, %118 : vector<8x256xf32>
    %120 = arith.addf %114, %119 : vector<8x256xf32>
    %c0_22 = arith.constant 0 : index
    %c20 = arith.constant 20 : index
    %121 = vector.load %arg0[%c0_22, %c20] : memref<8x24xf32, #tpu.memory_space<vmem>>, vector<8x1xf32>
    %122 = vector.extract_strided_slice %1 {offsets = [20, 0], sizes = [1, 256], strides = [1, 1]} : vector<24x256xf32> to vector<1x256xf32>
    %123 = vector.broadcast %121 : vector<8x1xf32> to vector<8x256xf32>
    %124 = vector.broadcast %122 : vector<1x256xf32> to vector<8x256xf32>
    %125 = arith.mulf %123, %124 : vector<8x256xf32>
    %126 = arith.addf %120, %125 : vector<8x256xf32>
    %c0_23 = arith.constant 0 : index
    %c21 = arith.constant 21 : index
    %127 = vector.load %arg0[%c0_23, %c21] : memref<8x24xf32, #tpu.memory_space<vmem>>, vector<8x1xf32>
    %128 = vector.extract_strided_slice %1 {offsets = [21, 0], sizes = [1, 256], strides = [1, 1]} : vector<24x256xf32> to vector<1x256xf32>
    %129 = vector.broadcast %127 : vector<8x1xf32> to vector<8x256xf32>
    %130 = vector.broadcast %128 : vector<1x256xf32> to vector<8x256xf32>
    %131 = arith.mulf %129, %130 : vector<8x256xf32>
    %132 = arith.addf %126, %131 : vector<8x256xf32>
    %c0_24 = arith.constant 0 : index
    %c22 = arith.constant 22 : index
    %133 = vector.load %arg0[%c0_24, %c22] : memref<8x24xf32, #tpu.memory_space<vmem>>, vector<8x1xf32>
    %134 = vector.extract_strided_slice %1 {offsets = [22, 0], sizes = [1, 256], strides = [1, 1]} : vector<24x256xf32> to vector<1x256xf32>
    %135 = vector.broadcast %133 : vector<8x1xf32> to vector<8x256xf32>
    %136 = vector.broadcast %134 : vector<1x256xf32> to vector<8x256xf32>
    %137 = arith.mulf %135, %136 : vector<8x256xf32>
    %138 = arith.addf %132, %137 : vector<8x256xf32>
    %c0_25 = arith.constant 0 : index
    %c23 = arith.constant 23 : index
    %139 = vector.load %arg0[%c0_25, %c23] : memref<8x24xf32, #tpu.memory_space<vmem>>, vector<8x1xf32>
    %140 = vector.extract_strided_slice %1 {offsets = [23, 0], sizes = [1, 256], strides = [1, 1]} : vector<24x256xf32> to vector<1x256xf32>
    %141 = vector.broadcast %139 : vector<8x1xf32> to vector<8x256xf32>
    %142 = vector.broadcast %140 : vector<1x256xf32> to vector<8x256xf32>
    %143 = arith.mulf %141, %142 : vector<8x256xf32>
    %144 = arith.addf %138, %143 : vector<8x256xf32>
    %c0_26 = arith.constant 0 : index
    %c0_27 = arith.constant 0 : index
    %145 = vector.load %arg4[%c0_26, %c0_27] : memref<7x256xf32, #tpu.memory_space<vmem>>, vector<1x256xf32>
    %c1_28 = arith.constant 1 : index
    %c0_29 = arith.constant 0 : index
    %146 = vector.load %arg4[%c1_28, %c0_29] : memref<7x256xf32, #tpu.memory_space<vmem>>, vector<1x256xf32>
    %cst = arith.constant dense<0.000000e+00> : vector<256xf32>
    %147 = vector.multi_reduction <add>, %144, %cst [0] : vector<8x256xf32> to vector<256xf32>
    %148 = vector.shape_cast %147 : vector<256xf32> to vector<1x256xf32>
    %cst_30 = arith.constant 1.250000e-01 : f32
    %149 = vector.broadcast %cst_30 : f32 to vector<1x256xf32>
    %150 = arith.mulf %148, %149 : vector<1x256xf32>
    %151 = arith.mulf %144, %144 : vector<8x256xf32>
    %cst_31 = arith.constant dense<0.000000e+00> : vector<256xf32>
    %152 = vector.multi_reduction <add>, %151, %cst_31 [0] : vector<8x256xf32> to vector<256xf32>
    %153 = vector.shape_cast %152 : vector<256xf32> to vector<1x256xf32>
    %cst_32 = arith.constant 1.250000e-01 : f32
    %154 = vector.broadcast %cst_32 : f32 to vector<1x256xf32>
    %155 = arith.mulf %153, %154 : vector<1x256xf32>
    %156 = arith.mulf %150, %150 : vector<1x256xf32>
    %157 = arith.subf %155, %156 : vector<1x256xf32>
    %cst_33 = arith.constant 0.000000e+00 : f32
    %158 = vector.broadcast %cst_33 : f32 to vector<1x256xf32>
    %159 = arith.maximumf %157, %158 : vector<1x256xf32>
    %cst_34 = arith.constant 9.99999974E-6 : f32
    %160 = vector.broadcast %cst_34 : f32 to vector<1x256xf32>
    %161 = arith.addf %159, %160 : vector<1x256xf32>
    %162 = math.rsqrt %161 : vector<1x256xf32>
    %163 = arith.mulf %162, %145 : vector<1x256xf32>
    %164 = vector.broadcast %150 : vector<1x256xf32> to vector<8x256xf32>
    %165 = arith.subf %144, %164 : vector<8x256xf32>
    %166 = vector.broadcast %163 : vector<1x256xf32> to vector<8x256xf32>
    %167 = arith.mulf %165, %166 : vector<8x256xf32>
    %168 = vector.broadcast %146 : vector<1x256xf32> to vector<8x256xf32>
    %169 = arith.addf %167, %168 : vector<8x256xf32>
    %cst_35 = arith.constant 0.000000e+00 : f32
    %170 = vector.broadcast %cst_35 : f32 to vector<8x256xf32>
    %171 = arith.maximumf %169, %170 : vector<8x256xf32>
    %c2_36 = arith.constant 2 : index
    %c0_37 = arith.constant 0 : index
    %172 = vector.load %arg4[%c2_36, %c0_37] : memref<7x256xf32, #tpu.memory_space<vmem>>, vector<1x128xf32>
    %173 = arith.truncf %171 : vector<8x256xf32> to vector<8x256xbf16>
    %c0_38 = arith.constant 0 : index
    %c0_39 = arith.constant 0 : index
    %174 = vector.load %arg3[%c0_38, %c0_39] : memref<256x128xbf16, #tpu.memory_space<vmem>>, vector<256x128xbf16>
    %cst_40 = arith.constant dense<0.000000e+00> : vector<8x128xf32>
    %175 = tpu.matmul %173, %174, %cst_40 {dimension_numbers = #tpu.dot_dimension_numbers<[1], [0], [0], [1], [0, 0, 1, 1], [], []>} : vector<8x256xbf16>, vector<256x128xbf16>, vector<8x128xf32> -> vector<8x128xf32>
    %176 = vector.broadcast %172 : vector<1x128xf32> to vector<8x128xf32>
    %177 = arith.addf %175, %176 : vector<8x128xf32>
    %c0_41 = arith.constant 0 : index
    %c0_42 = arith.constant 0 : index
    %178 = vector.load %arg1[%c0_41, %c0_42] : memref<8x2xf32, #tpu.memory_space<vmem>>, vector<8x1xf32>
    %c4_43 = arith.constant 4 : index
    %c0_44 = arith.constant 0 : index
    %179 = vector.load %arg4[%c4_43, %c0_44] : memref<7x256xf32, #tpu.memory_space<vmem>>, vector<1x128xf32>
    %180 = vector.broadcast %178 : vector<8x1xf32> to vector<8x128xf32>
    %181 = vector.broadcast %179 : vector<1x128xf32> to vector<8x128xf32>
    %182 = arith.mulf %180, %181 : vector<8x128xf32>
    %183 = arith.addf %177, %182 : vector<8x128xf32>
    %c0_45 = arith.constant 0 : index
    %c1_46 = arith.constant 1 : index
    %184 = vector.load %arg1[%c0_45, %c1_46] : memref<8x2xf32, #tpu.memory_space<vmem>>, vector<8x1xf32>
    %c5_47 = arith.constant 5 : index
    %c0_48 = arith.constant 0 : index
    %185 = vector.load %arg4[%c5_47, %c0_48] : memref<7x256xf32, #tpu.memory_space<vmem>>, vector<1x128xf32>
    %186 = vector.broadcast %184 : vector<8x1xf32> to vector<8x128xf32>
    %187 = vector.broadcast %185 : vector<1x128xf32> to vector<8x128xf32>
    %188 = arith.mulf %186, %187 : vector<8x128xf32>
    %189 = arith.addf %183, %188 : vector<8x128xf32>
    %cst_49 = arith.constant 0.000000e+00 : f32
    %190 = vector.broadcast %cst_49 : f32 to vector<8x128xf32>
    %191 = arith.maximumf %189, %190 : vector<8x128xf32>
    %c3_50 = arith.constant 3 : index
    %c0_51 = arith.constant 0 : index
    %192 = vector.load %arg4[%c3_50, %c0_51] : memref<7x256xf32, #tpu.memory_space<vmem>>, vector<1x128xf32>
    %c6_52 = arith.constant 6 : index
    %c0_53 = arith.constant 0 : index
    %193 = vector.load %arg4[%c6_52, %c0_53] : memref<7x256xf32, #tpu.memory_space<vmem>>, vector<1x1xf32>
    %194 = vector.broadcast %192 : vector<1x128xf32> to vector<8x128xf32>
    %195 = arith.mulf %191, %194 : vector<8x128xf32>
    %cst_54 = arith.constant dense<0.000000e+00> : vector<8xf32>
    %196 = vector.multi_reduction <add>, %195, %cst_54 [1] : vector<8x128xf32> to vector<8xf32>
    %197 = vector.shape_cast %196 : vector<8xf32> to vector<8x1xf32>
    %198 = vector.broadcast %193 : vector<1x1xf32> to vector<8x1xf32>
    %199 = arith.addf %197, %198 : vector<8x1xf32>
    %c0_55 = arith.constant 0 : index
    %c0_56 = arith.constant 0 : index
    %200 = vector.load %arg5[%c0_55, %c0_56] : memref<8x1xf32, #tpu.memory_space<vmem>>, vector<8x1xf32>
    tpu.vector_store %arg5[%c0_55, %c0_56], %199 {strides = array<i32>} : memref<8x1xf32, #tpu.memory_space<vmem>>, vector<8x1xf32>,
    return
  }
}

</mosaic_0001>

<bundles_post_ra>
// kernel: tpu_custom_call.1
= control target key start
LH: loop header
LB: loop body
LE: loop exit
PB: predicated region body
PF: predicated region fallthrough
CT: control target
= control target key end

     0   :  { %10 = vsyncpa [#allocation3], 0  ;;  %s1166_s0 = inlined_call_operand.vmem [shape: f32[8,24], index: 0, kind: input, shape index: {}]   ;;  %s1167_s1 = inlined_call_operand.vmem [shape: f32[8,2], index: 1, kind: input, shape index: {}]   ;;  %s1168_s2 = inlined_call_operand.hbm [shape: bf16[24,256], index: 2, kind: input, shape index: {}]   ;;  %s1169_s3 = inlined_call_operand.hbm [shape: bf16[256,128], index: 3, kind: input, shape index: {}]   ;;  %s1170_s4 = inlined_call_operand.vmem [shape: f32[7,256], index: 4, kind: input, shape index: {}]   ;;  %s1171_s5 = inlined_call_operand.vmem [shape: f32[8,1], index: 5, kind: output, shape index: {}]  }
   0x1   :  { %11 = vsyncpa [#allocation5], 0  ;;  %s891_s18 = smov [#allocation2]   ;;  %s843_s22 = scalar_lea.hbm %s1168_s2, 384 }
   0x2   :  { %s21_s19 = sshll.u32 %s891_s18, 4  ;;  %p844_p0 = scmp.ne.s32.totalorder %s1168_s2, %s843_s22  ;;  %s22_s19 = int_to_ptr.vmem [resolvable:$true] %s21_s19 }
   0x3   :  { %p847_p1 = scmp.lt.u32.totalorder %s843_s22, %s1168_s2 }
   0x5   :  { %p849_p2 = pnand %p847_p1, %p844_p0 }
   0x7   :  { %852 = shalt.err (!%p849_p2)
}
   0x8   :  { %s853_s27 = scalar_lea.vmem %s22_s19, 384  ;;  %p858_p4 = scmp.lt.s32.totalorder %s22_s19, %s22_s19 }
   0x9   :  { %p854_p3 = scmp.ne.s32.totalorder %s22_s19, %s853_s27  ;;  %p859_p5 = scmp.lt.s32.totalorder %s853_s27, %s853_s27 }
   0xb   :  { %p860_p6 = por %p859_p5, %p858_p4 }
   0xd   :  { %p861_p7 = pnand %p860_p6, %p854_p3 }
   0xf   :  { %864 = shalt.err (!%p861_p7)
}
  0x10   :  { %s892_s28 = smov 128   ;;  %s893_s29 = smov 8  }
  0x11   :  { %27 = dma.hbm_to_vmem [thread:$0]  %s1168_s2, 384, %s22_s19, [#allocation3], %s892_s28, %s892_s28, %s893_s29  }
  0x12   :  { %s894_s7 = smov [#allocation4]   ;;  %s865_s11 = scalar_lea.hbm %s1169_s3, 2048 }
  0x13   :  { %s33_s8 = sshll.u32 %s894_s7, 4  ;;  %p866_p8 = scmp.ne.s32.totalorder %s1169_s3, %s865_s11  ;;  %s34_s8 = int_to_ptr.vmem [resolvable:$true] %s33_s8 }
  0x14   :  { %p869_p9 = scmp.lt.u32.totalorder %s865_s11, %s1169_s3 }
  0x16   :  { %p871_p10 = pnand %p869_p9, %p866_p8 }
  0x18   :  { %874 = shalt.err (!%p871_p10)
}
  0x19   :  { %s875_s16 = scalar_lea.vmem %s34_s8, 2048  ;;  %p880_p12 = scmp.lt.s32.totalorder %s34_s8, %s34_s8 }
  0x1a   :  { %p876_p11 = scmp.ne.s32.totalorder %s34_s8, %s875_s16  ;;  %p881_p13 = scmp.lt.s32.totalorder %s875_s16, %s875_s16 }
  0x1c   :  { %p882_p0 = por %p881_p13, %p880_p12 }
  0x1e   :  { %p883_p1 = pnand %p882_p0, %p876_p11 }
  0x20   :  { %886 = shalt.err (!%p883_p1)
}
  0x21   :  { %s895_s2 = smov 64   ;;  %s896_s17 = smov 4  }
  0x22   :  { %39 = dma.hbm_to_vmem [thread:$0]  %s1169_s3, 2048, %s34_s8, [#allocation5], %s895_s2, %s895_s2, %s896_s17  }
  0x23   :  { %887 = dma.done.wait [#allocation3], 384  }
  0x24   :  { %888 = vsyncadd [#allocation3], 4294966912 }
  0x25   :  { %889 = dma.done.wait [#allocation5], 2048  }
  0x26   :  { %890 = vsyncadd [#allocation5], 4294965248  ;;  %v897_v0 = vmov 2   ;;  %v898_v1 = vmov 0   ;;  %v979_v2 = vld [vmem:[%s1166_s0] sm:$0xff]  ;;  %v899_v3 = vmov 3   ;;  %v64_v41 = vlaneseq }
  0x27   :  { %798 = vset.pattern.permute.xlu1 %v897_v0  ;;  %796 = vset.pattern.permute.xlu0 %v898_v1  ;;  %v900_v4 = vmov 1   ;;  %v901_v5 = vmov 4   ;;  %v902_v6 = vmov 5   ;;  %v903_v7 = vmov 6   ;;  %v823_v25 = vld [vmem:[#allocation4 + $0x40] sm:$0xff]   ;;  %v825_v27 = vld [vmem:[#allocation4 + $0x48] sm:$0xff]  }
  0x28   :  { %91 = vperm.xlu1 %798, %v979_v2   ;;  %61 = vperm.xlu0 %796, %v979_v2   ;;  %v904_v8 = vmov 8   ;;  %v905_v9 = vmov 7   ;;  %v906_v10 = vmov 11   ;;  %v907_v11 = vmov 9   ;;  %v824_v26 = vld [vmem:[#allocation4] sm:$0xff]   ;;  %v826_v28 = vld [vmem:[#allocation4 + $0x8] sm:$0xff]  }
  0x29   :  { %v908_v12 = vmov 14   ;;  %v909_v13 = vmov 10   ;;  %v910_v14 = vmov 17   ;;  %v911_v15 = vmov 12   ;;  %744 = vmatprep.subr.bf16.mxu0 %v823_v25  ;;  %v827_v29 = vld [vmem:[#allocation4 + $0x50] sm:$0xff]   ;;  %v829_v31 = vld [vmem:[#allocation4 + $0x58] sm:$0xff]  }
  0x2a   :  { %v912_v16 = vmov 20   ;;  %v913_v17 = vmov 13   ;;  %v914_v18 = vmov 23   ;;  %v915_v19 = vmov 15   ;;  %745 = vmatpush3.bf16.msra.mxu0 %v824_v26  ;;  %v828_v30 = vld [vmem:[#allocation4 + $0x10] sm:$0xff]   ;;  %v830_v32 = vld [vmem:[#allocation4 + $0x18] sm:$0xff]  }
  0x2b   :  { %v916_v20 = vmov 16   ;;  %v917_v21 = vmov 18   ;;  %v918_v22 = vmov 19   ;;  %v919_v23 = vmov 21   ;;  %746 = vmatprep.subr.bf16.mxu0 %v825_v27  ;;  %v831_v33 = vld [vmem:[#allocation4 + $0x60] sm:$0xff]   ;;  %v833_v35 = vld [vmem:[#allocation4 + $0x68] sm:$0xff]  }
  0x2c   :  { %799 = vset.pattern.permute.xlu1 %v899_v3  ;;  %797 = vset.pattern.permute.xlu0 %v900_v4  ;;  %v920_v24 = vmov 22   ;;  %v832_v34 = vld [vmem:[#allocation4 + $0x20] sm:$0xff]   ;;  %v834_v36 = vld [vmem:[#allocation4 + $0x28] sm:$0xff]   ;;  %v835_v37 = vld [vmem:[#allocation4 + $0x70] sm:$0xff]   ;;  %v65_v42 = vshrl.u32 %v64_v41, 7  ;;  %vm719_vm0 = vcmask 7168  }
  0x2d   :  { %107 = vperm.xlu1 %799, %v979_v2   ;;  %75 = vperm.xlu0 %797, %v979_v2   ;;  %v836_v38 = vld [vmem:[#allocation4 + $0x30] sm:$0xff]   ;;  %v837_v39 = vld [vmem:[#allocation4 + $0x78] sm:$0xff]   ;;  %v49_v43 = vld [vmem:[#allocation2] sm:$0xff] }
  0x2e   :  { %747 = vmatpush3.bf16.msra.mxu0 %v826_v28  ;;  %v838_v40 = vld [vmem:[#allocation4 + $0x38] sm:$0xff]   ;;  %v696_v44 = vld [vmem:[%s1167_s1] sm:$0xff]  ;;  %v1011_v45 = vsub.s32 0, %v65_v42  ;;  %v1013_v46 = vunpack.c.l.bf16 %v49_v43  ;;  %v1015_v47 = vunpack.c.h.bf16 %v49_v43  ;;  %v1017_v48 = vsub.s32 1, %v65_v42  ;;  %v50_v25 = vld [vmem:[#allocation2 + $0x8] sm:$0xff] }
  0x2f   :  { %748 = vmatprep.subr.bf16.mxu0 %v827_v29  ;;  %v1019_v49 = vsub.s32 2, %v65_v42  ;;  %v1026_v54 = vsub.s32 3, %v65_v42  ;;  %v1032_v57 = vsub.s32 4, %v65_v42  ;;  %v1038_v0 = vsub.s32 5, %v65_v42 }
  0x30   :  { %v67_v52 = vrot.slane %v1013_v46, %v1011_v45  ;;  %v71_v53 = vrot.slane %v1015_v47, %v1011_v45  ;;  %v81_v55 = vrot.slane %v1013_v46, %v1017_v48  ;;  %v85_v56 = vrot.slane %v1015_v47, %v1017_v48 }
  0x31   :  { %800 = vset.pattern.permute.xlu1 %v901_v5  ;;  %801 = vset.pattern.permute.xlu0 %v902_v6  ;;  %v97_v58 = vrot.slane %v1013_v46, %v1019_v49  ;;  %v101_v59 = vrot.slane %v1015_v47, %v1019_v49  ;;  %v129_v5 = vrot.slane %v1013_v46, %v1032_v57 }
  0x32   :  { %123 = vperm.xlu1 %800, %v979_v2   ;;  %139 = vperm.xlu0 %801, %v979_v2   ;;  %v133_v6 = vrot.slane %v1015_v47, %v1032_v57 }
  0x33   :  { %749 = vmatpush3.bf16.msra.mxu0 %v828_v30 }
  0x34   :  { %750 = vmatprep.subr.bf16.mxu0 %v829_v31 }
  0x36   :  { %802 = vset.pattern.permute.xlu1 %v903_v7  ;;  %804 = vset.pattern.permute.xlu0 %v904_v8 }
  0x37   :  { %155 = vperm.xlu1 %802, %v979_v2   ;;  %187 = vperm.xlu0 %804, %v979_v2  }
  0x38   :  { %751 = vmatpush3.bf16.msra.mxu0 %v830_v32 }
  0x39   :  { %752 = vmatprep.subr.bf16.mxu0 %v831_v33  ;;  %v1060_v33 = vunpack.c.l.bf16 %v50_v25 }
  0x3b   :  { %803 = vset.pattern.permute.xlu1 %v905_v9  ;;  %807 = vset.pattern.permute.xlu0 %v906_v10  ;;  %v193_v41 = vrot.slane %v1060_v33, %v1011_v45 }
  0x3c   :  { %171 = vperm.xlu1 %803, %v979_v2   ;;  %235 = vperm.xlu0 %807, %v979_v2  }
  0x3d   :  { %753 = vmatpush3.bf16.msra.mxu0 %v832_v34  ;;  %v1062_v34 = vunpack.c.h.bf16 %v50_v25 }
  0x3e   :  { %754 = vmatprep.subr.bf16.mxu0 %v833_v35 }
  0x40   :  { %805 = vset.pattern.permute.xlu1 %v907_v11  ;;  %810 = vset.pattern.permute.xlu0 %v908_v12  ;;  %v145_v11 = vrot.slane %v1013_v46, %v1038_v0  ;;  %v149_v12 = vrot.slane %v1015_v47, %v1038_v0 }
  0x41   :  { %203 = vperm.xlu1 %805, %v979_v2   ;;  %283 = vperm.xlu0 %810, %v979_v2  }
  0x42   :  { %755 = vmatpush3.bf16.msra.mxu0 %v834_v36 }
  0x43   :  { %756 = vmatprep.subr.bf16.mxu0 %v835_v37 }
  0x45   :  { %806 = vset.pattern.permute.xlu1 %v909_v13  ;;  %813 = vset.pattern.permute.xlu0 %v910_v14  ;;  %v1052_v13 = vsub.s32 6, %v65_v42 }
  0x46   :  { %219 = vperm.xlu1 %806, %v979_v2   ;;  %331 = vperm.xlu0 %813, %v979_v2  }
  0x47   :  { %757 = vmatpush3.bf16.msra.mxu0 %v836_v38  ;;  %v161_v28 = vrot.slane %v1013_v46, %v1052_v13  ;;  %v165_v29 = vrot.slane %v1015_v47, %v1052_v13 }
  0x48   :  { %758 = vmatprep.subr.bf16.mxu0 %v837_v39 }
  0x4a   :  { %808 = vset.pattern.permute.xlu1 %v911_v15  ;;  %816 = vset.pattern.permute.xlu0 %v912_v16 }
  0x4b   :  { %251 = vperm.xlu1 %808, %v979_v2   ;;  %379 = vperm.xlu0 %816, %v979_v2  }
  0x4c   :  { %759 = vmatpush3.bf16.msra.mxu0 %v838_v40 }
  0x4f   :  { %809 = vset.pattern.permute.xlu1 %v913_v17  ;;  %819 = vset.pattern.permute.xlu0 %v914_v18 }
  0x50   :  { %267 = vperm.xlu1 %809, %v979_v2   ;;  %427 = vperm.xlu0 %819, %v979_v2  }
  0x54   :  { %811 = vset.pattern.permute.xlu1 %v915_v19  ;;  %822 = vset.pattern.permute.xlu0 %v900_v4 }
  0x55   :  { %299 = vperm.xlu1 %811, %v979_v2  }
  0x59   :  { %812 = vset.pattern.permute.xlu1 %v916_v20 }
  0x5a   :  { %315 = vperm.xlu1 %812, %v979_v2  }
  0x5e   :  { %814 = vset.pattern.permute.xlu1 %v917_v21 }
  0x5f   :  { %347 = vperm.xlu1 %814, %v979_v2  }
  0x63   :  { %815 = vset.pattern.permute.xlu1 %v918_v22 }
  0x64   :  { %363 = vperm.xlu1 %815, %v979_v2  }
  0x68   :  { %817 = vset.pattern.permute.xlu1 %v919_v23 }
  0x69   :  { %395 = vperm.xlu1 %817, %v979_v2  }
  0x6d   :  { %818 = vset.pattern.permute.xlu1 %v920_v24  ;;  %v1054_v24 = vsub.s32 7, %v65_v42  ;;  %v197_v42 = vrot.slane %v1062_v34, %v1011_v45 }
  0x6e   :  { %411 = vperm.xlu1 %818, %v979_v2   ;;  %v117_v2 = vrot.slane %v1015_v47, %v1026_v54 }
  0x6f   :  { %v177_v35 = vrot.slane %v1013_v46, %v1054_v24  ;;  %v181_v36 = vrot.slane %v1015_v47, %v1054_v24  ;;  %v213_v47 = vrot.slane %v1062_v34, %v1017_v48 }
  0x72   :  { %820 = vset.pattern.permute.xlu1 %v898_v1  ;;  %v113_v1 = vrot.slane %v1013_v46, %v1026_v54  ;;  %v209_v46 = vrot.slane %v1060_v33, %v1017_v48 }
  0x73   :  { %700 = vperm.xlu1 %820, %v696_v44  }
  0x77   :  { %821 = vset.pattern.permute.xlu1 %v900_v4 }
  0x78   :  { %707 = vperm.xlu1 %821, %v696_v44  }
  0xa7   :  { %v92_v50 = vpop.permute.xlu1 %91  ;;  %v62_v51 = vpop.permute.xlu0 %61 }
  0xa8   :  { %v72_v60 = vmul.f32 %v67_v52, %v62_v51  ;;  %v73_v61 = vmul.f32 %v71_v53, %v62_v51  ;;  %v102_v7 = vmul.f32 %v97_v58, %v92_v50  ;;  %v103_v8 = vmul.f32 %v101_v59, %v92_v50 }
  0xac   :  { %v108_v62 = vpop.permute.xlu1 %107  ;;  %v76_v63 = vpop.permute.xlu0 %75 }
  0xad   :  { %v86_v3 = vmul.f32 %v81_v55, %v76_v63  ;;  %v87_v4 = vmul.f32 %v85_v56, %v76_v63  ;;  %v118_v14 = vmul.f32 %v113_v1, %v108_v62  ;;  %v119_v15 = vmul.f32 %v117_v2, %v108_v62 }
  0xae   :  { %v229_v62 = vrot.slane %v1062_v34, %v1019_v49 }
  0xaf   :  { %v88_v9 = vadd.f32 %v86_v3, %v72_v60  ;;  %v89_v10 = vadd.f32 %v87_v4, %v73_v61  ;;  %v225_v61 = vrot.slane %v1060_v33, %v1019_v49  ;;  %v241_v4 = vrot.slane %v1060_v33, %v1026_v54 }
  0xb1   :  { %v104_v16 = vadd.f32 %v102_v7, %v88_v9  ;;  %v105_v17 = vadd.f32 %v103_v8, %v89_v10  ;;  %v124_v18 = vpop.permute.xlu1 %123  ;;  %v140_v19 = vpop.permute.xlu0 %139 }
  0xb2   :  { %v134_v20 = vmul.f32 %v129_v5, %v124_v18  ;;  %v135_v21 = vmul.f32 %v133_v6, %v124_v18  ;;  %v150_v26 = vmul.f32 %v145_v11, %v140_v19  ;;  %v151_v27 = vmul.f32 %v149_v12, %v140_v19 }
  0xb3   :  { %v120_v22 = vadd.f32 %v118_v14, %v104_v16  ;;  %v121_v23 = vadd.f32 %v119_v15, %v105_v17  ;;  %v245_v5 = vrot.slane %v1062_v34, %v1026_v54  ;;  %v257_v12 = vrot.slane %v1060_v33, %v1032_v57 }
  0xb4   :  { %v261_v14 = vrot.slane %v1062_v34, %v1032_v57 }
  0xb5   :  { %v136_v30 = vadd.f32 %v134_v20, %v120_v22  ;;  %v137_v31 = vadd.f32 %v135_v21, %v121_v23  ;;  %v273_v20 = vrot.slane %v1060_v33, %v1038_v0  ;;  %v277_v21 = vrot.slane %v1062_v34, %v1038_v0 }
  0xb6   :  { %v156_v32 = vpop.permute.xlu1 %155  ;;  %v188_v44 = vpop.permute.xlu0 %187 }
  0xb7   :  { %v152_v37 = vadd.f32 %v150_v26, %v136_v30  ;;  %v153_v38 = vadd.f32 %v151_v27, %v137_v31  ;;  %v166_v39 = vmul.f32 %v161_v28, %v156_v32  ;;  %v167_v40 = vmul.f32 %v165_v29, %v156_v32  ;;  %v51_v29 = vld [vmem:[#allocation2 + $0x10] sm:$0xff] }
  0xb8   :  { %v198_v58 = vmul.f32 %v193_v41, %v188_v44  ;;  %v199_v59 = vmul.f32 %v197_v42, %v188_v44  ;;  %v289_v27 = vrot.slane %v1060_v33, %v1052_v13  ;;  %v293_v28 = vrot.slane %v1062_v34, %v1052_v13 }
  0xb9   :  { %v168_v50 = vadd.f32 %v166_v39, %v152_v37  ;;  %v169_v51 = vadd.f32 %v167_v40, %v153_v38  ;;  %v305_v38 = vrot.slane %v1060_v33, %v1054_v24  ;;  %v309_v39 = vrot.slane %v1062_v34, %v1054_v24 }
  0xba   :  { %v1100_v40 = vunpack.c.l.bf16 %v51_v29  ;;  %v1102_v41 = vunpack.c.h.bf16 %v51_v29 }
  0xbb   :  { %v172_v43 = vpop.permute.xlu1 %171  ;;  %v236_v7 = vpop.permute.xlu0 %235 }
  0xbc   :  { %v182_v52 = vmul.f32 %v177_v35, %v172_v43  ;;  %v183_v53 = vmul.f32 %v181_v36, %v172_v43  ;;  %v246_v17 = vmul.f32 %v241_v4, %v236_v7  ;;  %v247_v18 = vmul.f32 %v245_v5, %v236_v7 }
  0xbd   :  { %v337_v34 = vrot.slane %v1100_v40, %v1017_v48  ;;  %v421_v29 = vrot.slane %v1102_v41, %v1052_v13 }
  0xbe   :  { %v184_v55 = vadd.f32 %v182_v52, %v168_v50  ;;  %v185_v56 = vadd.f32 %v183_v53, %v169_v51  ;;  %v321_v52 = vrot.slane %v1100_v40, %v1011_v45  ;;  %v325_v53 = vrot.slane %v1102_v41, %v1011_v45 }
  0xc0   :  { %v204_v60 = vpop.permute.xlu1 %203  ;;  %v200_v63 = vadd.f32 %v198_v58, %v184_v55  ;;  %v201_v1 = vadd.f32 %v199_v59, %v185_v56  ;;  %v284_v31 = vpop.permute.xlu0 %283  ;;  %v341_v56 = vrot.slane %v1102_v41, %v1017_v48 }
  0xc1   :  { %v214_v2 = vmul.f32 %v209_v46, %v204_v60  ;;  %v215_v3 = vmul.f32 %v213_v47, %v204_v60  ;;  %v294_v44 = vmul.f32 %v289_v27, %v284_v31  ;;  %v295_v50 = vmul.f32 %v293_v28, %v284_v31 }
  0xc2   :  { %v437_v31 = vrot.slane %v1102_v41, %v1054_v24 }
  0xc3   :  { %v216_v8 = vadd.f32 %v214_v2, %v200_v63  ;;  %v217_v9 = vadd.f32 %v215_v3, %v201_v1  ;;  %v353_v1 = vrot.slane %v1100_v40, %v1019_v49  ;;  %v357_v2 = vrot.slane %v1102_v41, %v1019_v49 }
  0xc4   :  { %v389_v49 = vrot.slane %v1102_v41, %v1032_v57 }
  0xc5   :  { %v220_v6 = vpop.permute.xlu1 %219  ;;  %v332_v59 = vpop.permute.xlu0 %331 }
  0xc6   :  { %v230_v10 = vmul.f32 %v225_v61, %v220_v6  ;;  %v231_v11 = vmul.f32 %v229_v62, %v220_v6  ;;  %v342_v5 = vmul.f32 %v337_v34, %v332_v59  ;;  %v343_v6 = vmul.f32 %v341_v56, %v332_v59 }
  0xc8   :  { %v232_v15 = vadd.f32 %v230_v10, %v216_v8  ;;  %v233_v16 = vadd.f32 %v231_v11, %v217_v9  ;;  %v369_v8 = vrot.slane %v1100_v40, %v1026_v54  ;;  %v373_v9 = vrot.slane %v1102_v41, %v1026_v54 }
  0xc9   :  { %v405_v54 = vrot.slane %v1102_v41, %v1038_v0 }
  0xca   :  { %v252_v19 = vpop.permute.xlu1 %251  ;;  %v248_v22 = vadd.f32 %v246_v17, %v232_v15  ;;  %v249_v23 = vadd.f32 %v247_v18, %v233_v16  ;;  %v385_v15 = vrot.slane %v1100_v40, %v1032_v57  ;;  %v380_v17 = vpop.permute.xlu0 %379  ;;  %v417_v57 = vrot.slane %v1100_v40, %v1052_v13 }
  0xcb   :  { %v262_v25 = vmul.f32 %v257_v12, %v252_v19  ;;  %v263_v26 = vmul.f32 %v261_v14, %v252_v19  ;;  %v391_v27 = vmul.f32 %v389_v49, %v380_v17 }
  0xcd   :  { %v264_v32 = vadd.f32 %v262_v25, %v248_v22  ;;  %v265_v35 = vadd.f32 %v263_v26, %v249_v23  ;;  %v401_v22 = vrot.slane %v1100_v40, %v1038_v0  ;;  %v390_v26 = vmul.f32 %v385_v15, %v380_v17 }
  0xcf   :  { %v268_v30 = vpop.permute.xlu1 %267 }
  0xd0   :  { %v278_v36 = vmul.f32 %v273_v20, %v268_v30  ;;  %v279_v37 = vmul.f32 %v277_v21, %v268_v30  ;;  %v433_v30 = vrot.slane %v1100_v40, %v1054_v24 }
  0xd2   :  { %v280_v42 = vadd.f32 %v278_v36, %v264_v32  ;;  %v281_v43 = vadd.f32 %v279_v37, %v265_v35  ;;  %v428_v37 = vpop.permute.xlu0 %427 }
  0xd4   :  { %v300_v51 = vpop.permute.xlu1 %299  ;;  %v296_v46 = vadd.f32 %v294_v44, %v280_v42  ;;  %v297_v33 = vadd.f32 %v295_v50, %v281_v43  ;;  %v439_v42 = vmul.f32 %v437_v31, %v428_v37 }
  0xd5   :  { %v310_v47 = vmul.f32 %v305_v38, %v300_v51  ;;  %v311_v55 = vmul.f32 %v309_v39, %v300_v51  ;;  %v438_v39 = vmul.f32 %v433_v30, %v428_v37 }
  0xd7   :  { %v312_v60 = vadd.f32 %v310_v47, %v296_v46  ;;  %v313_v61 = vadd.f32 %v311_v55, %v297_v33 }
  0xd9   :  { %v316_v58 = vpop.permute.xlu1 %315 }
  0xda   :  { %v326_v62 = vmul.f32 %v321_v52, %v316_v58  ;;  %v327_v63 = vmul.f32 %v325_v53, %v316_v58 }
  0xdc   :  { %v328_v3 = vadd.f32 %v326_v62, %v312_v60  ;;  %v329_v4 = vadd.f32 %v327_v63, %v313_v61 }
  0xde   :  { %v348_v7 = vpop.permute.xlu1 %347  ;;  %v344_v10 = vadd.f32 %v342_v5, %v328_v3  ;;  %v345_v11 = vadd.f32 %v343_v6, %v329_v4 }
  0xdf   :  { %v358_v12 = vmul.f32 %v353_v1, %v348_v7  ;;  %v359_v14 = vmul.f32 %v357_v2, %v348_v7 }
  0xe1   :  { %v360_v18 = vadd.f32 %v358_v12, %v344_v10  ;;  %v361_v19 = vadd.f32 %v359_v14, %v345_v11 }
  0xe3   :  { %v364_v16 = vpop.permute.xlu1 %363 }
  0xe4   :  { %v374_v20 = vmul.f32 %v369_v8, %v364_v16  ;;  %v375_v21 = vmul.f32 %v373_v9, %v364_v16 }
  0xe6   :  { %v376_v23 = vadd.f32 %v374_v20, %v360_v18  ;;  %v377_v25 = vadd.f32 %v375_v21, %v361_v19 }
  0xe8   :  { %v396_v28 = vpop.permute.xlu1 %395  ;;  %v392_v32 = vadd.f32 %v390_v26, %v376_v23  ;;  %v393_v35 = vadd.f32 %v391_v27, %v377_v25  ;;  %v442_v25 = vld [vmem:[%s1170_s4] ss:$8 sm:$0x3] }
  0xe9   :  { %v406_v0 = vmul.f32 %v401_v22, %v396_v28  ;;  %v407_v36 = vmul.f32 %v405_v54, %v396_v28  ;;  %v493_v26 = vrot.slane %v442_v25, %v1017_v48  ;;  %v489_v27 = vrot.slane %v442_v25, %v1011_v45 }
  0xeb   :  { %v408_v43 = vadd.f32 %v406_v0, %v392_v32  ;;  %v409_v44 = vadd.f32 %v407_v36, %v393_v35 }
  0xed   :  { %v412_v38 = vpop.permute.xlu1 %411 }
  0xee   :  { %v422_v50 = vmul.f32 %v417_v57, %v412_v38  ;;  %v423_v51 = vmul.f32 %v421_v29, %v412_v38  ;;  %v727_v57 = vld [vmem:[%s1170_s4 + $0x1] ss:$8 sm:$0x3] }
  0xef   :  { %v518_v0 = vrot.slane %v727_v57, %v1017_v48  ;;  %v514_v36 = vrot.slane %v727_v57, %v1011_v45  ;;  %v697_v48 = vld [vmem:[%s1170_s4 + $0x4] ss:$0 sm:$0xff] }
  0xf0   :  { %v424_v52 = vadd.f32 %v422_v50, %v408_v43  ;;  %v425_v13 = vadd.f32 %v423_v51, %v409_v44 }
  0xf2   :  { %v440_v53 = vadd.f32 %v438_v39, %v424_v52  ;;  %v441_v46 = vadd.f32 %v439_v42, %v425_v13 }
  0xf4   :  { %v445_v40 = vrot.slane %v440_v53, 4  ;;  %v451_v33 = vrot.slane %v441_v46, 4  ;;  %v459_v47 = vmul.f32 %v440_v53, %v440_v53  ;;  %v460_v24 = vmul.f32 %v441_v46, %v441_v46 }
  0xf6   :  { %v446_v41 = vadd.f32 %v445_v40, %v440_v53  ;;  %v461_v55 = vrot.slane %v459_v47, 4  ;;  %v467_v34 = vrot.slane %v460_v24, 4  ;;  %v452_v56 = vadd.f32 %v451_v33, %v441_v46  ;;  %v705_v33 = vld [vmem:[%s1170_s4 + $0x5] ss:$0 sm:$0xff] }
  0xf8   :  { %v447_v58 = vrot.slane %v446_v41, 2  ;;  %v462_v59 = vadd.f32 %v461_v55, %v459_v47  ;;  %v468_v60 = vadd.f32 %v467_v34, %v460_v24  ;;  %v453_v61 = vrot.slane %v452_v56, 2 }
  0xfa   :  { %v463_v62 = vrot.slane %v462_v59, 2  ;;  %v469_v63 = vrot.slane %v468_v60, 2  ;;  %v454_v1 = vadd.f32 %v453_v61, %v452_v56  ;;  %v448_v2 = vadd.f32 %v447_v58, %v446_v41  ;;  %v713_v61 = vld [vmem:[%s1170_s4 + $0x3] ss:$0 sm:$0xff] }
  0xfc   :  { %v464_v3 = vadd.f32 %v463_v62, %v462_v59  ;;  %v455_v4 = vrot.slane %v454_v1, 1  ;;  %v470_v5 = vadd.f32 %v469_v63, %v468_v60  ;;  %v449_v6 = vrot.slane %v448_v2, 1 }
  0xfe   :  { %v465_v7 = vrot.slane %v464_v3, 1  ;;  %v456_v8 = vadd.f32 %v455_v4, %v454_v1  ;;  %v471_v9 = vrot.slane %v470_v5, 1  ;;  %v450_v10 = vadd.f32 %v449_v6, %v448_v2  ;;  %v714_v1 = vld [vmem:[%s1170_s4 + $0x6] ss:$0 sm:$0xff] }
 0x100   :  { %v458_v11 = vmul.f32 0.125, %v456_v8  ;;  %v472_v12 = vadd.f32 %v471_v9, %v470_v5  ;;  %v457_v14 = vmul.f32 0.125, %v450_v10  ;;  %v466_v15 = vadd.f32 %v465_v7, %v464_v3 }
 0x102   :  { %v474_v49 = vmul.f32 0.125, %v472_v12  ;;  %v476_v16 = vmul.f32 %v458_v11, %v458_v11  ;;  %v473_v17 = vmul.f32 0.125, %v466_v15  ;;  %v475_v18 = vmul.f32 %v457_v14, %v457_v14 }
 0x103   :  { %v499_v32 = vsub.f32 %v441_v46, %v458_v11  ;;  %v498_v37 = vsub.f32 %v440_v53, %v457_v14  ;;  %v701_v46 = vpop.permute.xlu1 %700 }
 0x104   :  { %v478_v19 = vsub.f32 %v474_v49, %v476_v16  ;;  %v477_v20 = vsub.f32 %v473_v17, %v475_v18  ;;  %v703_v34 = vmul.f32 %v701_v46, %v697_v48 }
 0x106   :  { %v480_v21 = vmax.f32 %v478_v19, 0.0  ;;  %v479_v22 = vmax.f32 %v477_v20, 0.0 }
 0x107   :  { %v708_v47 = vpop.permute.xlu1 %707 }
 0x108   :  { %v482_v54 = vadd.f32 1e-05, %v480_v21  ;;  %v481_v23 = vadd.f32 1e-05, %v479_v22  ;;  %v710_v58 = vmul.f32 %v708_v47, %v705_v33 }
 0x10a   :  { %839 = vrsqrt.f32 %v482_v54 }
 0x10b   :  { %841 = vrsqrt.f32 %v481_v23 }
 0x114   :  { %v840_v28 = vpop.eup %839 }
 0x115   :  { %v842_v29 = vpop.eup %841  ;;  %v497_v30 = vmul.f32 %v840_v28, %v493_v26 }
 0x116   :  { %v496_v31 = vmul.f32 %v842_v29, %v489_v27 }
 0x117   :  { %v507_v35 = vrot.slane %v497_v30, %v1011_v45 }
 0x118   :  { %v503_v38 = vrot.slane %v496_v31, %v1011_v45  ;;  %v525_v45 = vld [vmem:[%s1170_s4 + $0x2] ss:$0 sm:$0xff] }
 0x119   :  { %v509_v39 = vmul.f32 %v507_v35, %v499_v32 }
 0x11a   :  { %v508_v42 = vmul.f32 %v503_v38, %v498_v37 }
 0x11b   :  { %v522_v43 = vadd.f32 %v518_v0, %v509_v39 }
 0x11c   :  { %v521_v44 = vadd.f32 %v514_v36, %v508_v42 }
 0x11d   :  { %v524_v50 = vmax.f32 %v522_v43, 0.0 }
 0x11e   :  { %v523_v51 = vmax.f32 %v521_v44, 0.0 }
 0x11f   :  { %v527_v52 = vpack.c.bf16 %v524_v50, %v524_v50 }
 0x120   :  { %v526_v13 = vpack.c.bf16 %v523_v51, %v523_v51 }
 0x121   :  { %688 = vmatprep.mubr.bf16.mxu0 %v527_v52 }
 0x122   :  { %689 = vmatmul.mubr.bf16.vlgmr.msra.gmra.mrb[0].mxu0 %v526_v13 }
 0x1f5   :  { %v760_v40 = vpop.f32.mrb[0].mxu0 }
 0x1f6   :  { %v761_v53 = vpop.f32.mrb[1].mxu0 }
 0x1f7   :  { %v762_v24 = vadd.f32 %v761_v53, %v760_v40  ;;  %v763_v41 = vpop.f32.mrb[2].mxu0 }
 0x1f8   :  { %v764_v55 = vpop.f32.mrb[3].mxu0 }
 0x1f9   :  { %v691_v56 = vadd.f32 %v762_v24, %v525_v45 }
 0x1fb   :  { %v704_v59 = vadd.f32 %v703_v34, %v691_v56 }
 0x1fd   :  { %v711_v60 = vadd.f32 %v710_v58, %v704_v59 }
 0x1ff   :  { %v712_v62 = vmax.f32 %v711_v60, 0.0 }
 0x201   :  { %v715_v63 = vmul.f32 %v713_v61, %v712_v62 }
 0x203   :  { %716 = vadd.xlane.f32.xlu0 %v715_v63 }
 0x290   :  { %v717_v2 = vpop.xlane.xlu0 %716 }
 0x291   :  { %v718_v3 = vadd.f32 %v717_v2, %v714_v1 }
 0x293   :  { %720 = vst.msk [vmem:[%s1171_s5] sm:$0xff] %vm719_vm0, %v718_v3 }
 0x294   :  { %725 = vsyncpa [#allocation3], 1 }
 0x295   :  { %726 = vsyncpa [#allocation5], 1 }

</bundles_post_ra>
